<compile_context>
chip_gen: v7x
topology: tpu7x:2x2x1
jax: 0.10.0
libtpu: 0.0.40
codegen_flags: <defaults>
</compile_context>

<pallas_src>
import numpy as np
import jax
import jax.numpy as jnp
from jax.experimental import pallas as pl
from jax.experimental.pallas import tpu as pltpu


def _round_up(x, m):
    return -(-x // m) * m


# --------------------------------------------------------------------------
# Pallas kernel: K-tiled matmul (f32 VMEM accumulator) + bias + LeakyReLU
# --------------------------------------------------------------------------
def _matmul_bias_lrelu_kernel(a_ref, b_ref, bias_ref, o_ref, acc_ref):
    # a_ref:    (TM, tk)      bf16  im2col rows for this (M, K) tile
    # b_ref:    (tk, C_pad)   bf16  BN-scale-folded weight slab for this K tile
    # bias_ref: (1,  C_pad)   f32   beta - mean * scale
    # o_ref:    (TM, C_pad)   out   lane-dense output tile (input dtype)
    # acc_ref:  (TM, C_pad)   f32   accumulator, resident across the K axis
    k = pl.program_id(1)

    @pl.when(k == 0)
    def _():
        acc_ref[...] = jnp.zeros_like(acc_ref)

    acc_ref[...] += jnp.dot(a_ref[...], b_ref[...],
                            preferred_element_type=jnp.float32)

    @pl.when(k == pl.num_programs(1) - 1)
    def _():
        y = acc_ref[...] + bias_ref[...]          # BN bias (scale already in B)
        o_ref[...] = jnp.maximum(y, 0.01 * y).astype(o_ref.dtype)  # LeakyReLU


# --------------------------------------------------------------------------
# Polyphase im2col (bf16): gathers only real input pixels, handles
# stride/padding without materializing a zero-dilated / padded tensor.
# --------------------------------------------------------------------------
def _polyphase_im2col(x_nhwc, KH, KW, stride, padding, Ho, Wo):
    # ConvTranspose2d: O[oh,ow] = sum_{kh,kw} X[(oh+p-kh)/s, (ow+p-kw)/s] * W[kh,kw]
    #                  (term present only if the division is exact & in range)
    N, H, W, Cin = x_nhwc.shape
    zero = jnp.zeros((), x_nhwc.dtype)
    oh = jnp.arange(Ho)
    ow = jnp.arange(Wo)
    cols = []
    for kh in range(KH):
        ih_num = oh + padding - kh
        ih_ok = (ih_num >= 0) & (ih_num % stride == 0) & (ih_num // stride < H)
        ih = jnp.clip(ih_num // stride, 0, H - 1)
        for kw in range(KW):
            iw_num = ow + padding - kw
            iw_ok = (iw_num >= 0) & (iw_num % stride == 0) & (iw_num // stride < W)
            iw = jnp.clip(iw_num // stride, 0, W - 1)
            g = x_nhwc[:, ih][:, :, iw]                          # (N, Ho, Wo, Cin)
            mask = (ih_ok[:, None] & iw_ok[None, :])[None, :, :, None]
            cols.append(jnp.where(mask, g, zero))
    return jnp.concatenate(cols, axis=-1)                        # (N, Ho, Wo, KH*KW*Cin)


# --------------------------------------------------------------------------
# Public wrapper (NCHW in / NCHW out, like the PyTorch module)
# --------------------------------------------------------------------------
def conv_tbn_relu(x_nchw, weight_t, gamma, beta, run_mean, run_var,
                  stride=1, padding=0, eps=1e-5, out_dtype=None,
                  channels_last=False):
    """x_nchw: (N, Cin, H, W); weight_t: nn.ConvTranspose2d weight (Cin, Cout, KH, KW)."""
    N, Cin, H, W = x_nchw.shape
    Cin_w, Cout, KH, KW = weight_t.shape
    assert Cin == Cin_w, (Cin, Cin_w)
    if out_dtype is None:
        out_dtype = x_nchw.dtype

    Ho = (H - 1) * stride + KH - 2 * padding
    Wo = (W - 1) * stride + KW - 2 * padding
    assert Ho > 0 and Wo > 0, "padding too large for this kernel size / input"

    # ---- fold BN (eval mode): scale -> weight, bias stays separate ---------
    scale = gamma * jax.lax.rsqrt(run_var + eps)                 # (Cout,)
    bias = beta - run_mean * scale                               # (Cout,)

    Kd = KH * KW * Cin
    w = jnp.transpose(weight_t, (2, 3, 0, 1)).astype(jnp.float32) * scale[None, None, None, :]
    B = w.reshape(Kd, Cout)                                      # (Kd, Cout), scale folded

    # ---- polyphase im2col directly in bf16 (halves the dominant HBM stream)
    x = jnp.transpose(x_nchw, (0, 2, 3, 1)).astype(jnp.bfloat16)     # NHWC, bf16
    A = _polyphase_im2col(x, KH, KW, stride, padding, Ho, Wo).reshape(N * Ho * Wo, Kd)

    # ---- tiling / padding ---------------------------------------------------
    LANE = 128
    M = N * Ho * Wo
    C_pad = _round_up(Cout, LANE)

    # Large M tiles for HBM roofline, but keep >= 2 grid steps for v7x megacore.
    TM = 512
    if M <= TM and M > 256:
        TM = 256
    M_pad = _round_up(M, TM)

    # K padding / tiling: small Kd -> single resident weight slab; large Kd ->
    # stream it with tk=512 K tiles (bounded per-step VMEM on v7x).
    if Kd <= 2048:
        Kd_pad = _round_up(Kd, LANE) if (Cin >= 32 and Kd % LANE != 0) else Kd
        tk = Kd_pad
    else:
        tk = 512
        Kd_pad = _round_up(Kd, tk)
    kd_tiles = Kd_pad // tk

    A = jnp.pad(A, ((0, M_pad - M), (0, Kd_pad - Kd)))               # stays bf16
    B = jnp.pad(B, ((0, Kd_pad - Kd), (0, C_pad - Cout))).astype(jnp.bfloat16)
    bias_p = jnp.pad(bias, (0, C_pad - Cout)).reshape(1, C_pad).astype(jnp.float32)

    # ---- BlockSpecs ---------------------------------------------------------
    a_spec = pl.BlockSpec((TM, tk), lambda i, k: (i, k))
    if kd_tiles == 1:
        # Grid-invariant weight slab: single-buffer to save VMEM (v7x-critical).
        b_spec = pl.BlockSpec((tk, C_pad), lambda i, k: (k, 0),
                              pipeline_mode=pl.Buffered(1))
    else:
        b_spec = pl.BlockSpec((tk, C_pad), lambda i, k: (k, 0))
    bias_spec = pl.BlockSpec((1, C_pad), lambda i, k: (0, 0),
                             pipeline_mode=pl.Buffered(1))
    o_spec = pl.BlockSpec((TM, C_pad), lambda i, k: (i, 0))

    # ---- VMEM budget (double-buffered A/O, B per above, f32 accumulator) ---
    out_bytes = jnp.dtype(out_dtype).itemsize
    vmem_bytes = (2 * TM * tk * 2
                  + (1 if kd_tiles == 1 else 2) * tk * C_pad * 2
                  + 2 * TM * C_pad * out_bytes
                  + TM * C_pad * 4
                  + 2 * C_pad * 4)
    vmem_limit = int(min(64 * 2**20, max(32 * 2**20, 2 * vmem_bytes)))

    out = pl.pallas_call(
        _matmul_bias_lrelu_kernel,
        out_shape=jax.ShapeDtypeStruct((M_pad, C_pad), out_dtype),
        grid=(M_pad // TM, kd_tiles),
        in_specs=[a_spec, b_spec, bias_spec],
        out_specs=o_spec,
        scratch_shapes=[pltpu.VMEM((TM, C_pad), jnp.float32)],
        compiler_params=pltpu.CompilerParams(
            dimension_semantics=("parallel", "arbitrary"),
            vmem_limit_bytes=vmem_limit),
    )(A, B, bias_p)

    out = out[:M, :Cout].reshape(N, Ho, Wo, Cout)
    if channels_last:
        return out                                               # NHWC, skips transpose
    return jnp.transpose(out, (0, 3, 1, 2))                      # back to NCHW


# --------------------------------------------------------------------------
# Pure numpy reference: scatter-add transposed conv + BN(eval) + LeakyReLU
# --------------------------------------------------------------------------
def _reference_forward(x, w, gamma, beta, mean, var, stride, padding,
                       eps=1e-5, slope=0.01):
    x, w = np.asarray(x, np.float32), np.asarray(w, np.float32)
    N, Cin, H, W = x.shape
    _, Cout, KH, KW = w.shape
    Hf, Wf = (H - 1) * stride + KH, (W - 1) * stride + KW
    out = np.zeros((N, Cout, Hf, Wf), np.float32)
    for i in range(H):
        for j in range(W):
            out[:, :, i * stride:i * stride + KH, j * stride:j * stride + KW] += \
                np.einsum('nc,cdkl->ndkl', x[:, :, i, j], w)
    out = out[:, :, padding:Hf - padding, padding:Wf - padding]
    scale = np.asarray(gamma) / np.sqrt(np.asarray(var) + eps)
    bias = np.asarray(beta) - np.asarray(mean) * scale
    out = out * scale[None, :, None, None] + bias[None, :, None, None]
    return np.where(out >= 0, out, slope * out)


if __name__ == "__main__":
    key = jax.random.PRNGKey(0)
    kx, kw = jax.random.split(key)

    cases = [
        # (N, Cin, Cout, H,  W,  K, stride, padding)
        (2, 4, 8, 16, 16, 3, 1, 0),   # module defaults
        (2, 4, 8, 16, 16, 3, 2, 1),   # exercises the polyphase (stride>1) path
    ]
    for (N, Cin, Cout, H, W, K, stride, padding) in cases:
        x = jax.random.normal(kx, (N, Cin, H, W), jnp.float32)
        # nn.ConvTranspose2d weight shape: (in_planes, out_planes, KH, KW)
        weight_t = jax.random.normal(kw, (Cin, Cout, K, K), jnp.float32) * 0.1

        # deterministic (non-trivial) BatchNorm2d parameters / running stats
        gamma = 1.0 + 0.1 * jnp.arange(Cout, dtype=jnp.float32)
        beta = 0.05 * jnp.arange(Cout, dtype=jnp.float32)
        run_mean = 0.01 * jnp.arange(Cout, dtype=jnp.float32)
        run_var = 1.0 + 0.02 * jnp.arange(Cout, dtype=jnp.float32)

        out = conv_tbn_relu(x, weight_t, gamma, beta, run_mean, run_var,
                            stride=stride, padding=padding)
        out = jax.block_until_ready(out)

        ref = _reference_forward(x, weight_t, gamma, beta, run_mean, run_var,
                                 stride, padding)
        assert out.shape == ref.shape, (out.shape, ref.shape)
        # bf16 operands (f32 accumulation / epilogue) -> relaxed tolerance
        np.testing.assert_allclose(np.asarray(out, np.float32), ref,
                                   rtol=3e-2, atol=3e-2)

    print("KERNEL_OK")
</pallas_src>

<mosaic_0001>
module attributes {stable_mosaic.version = 11 : i64} {
  func.func @_matmul_bias_lrelu_kernel(%arg0: i32, %arg1: i32, %arg2: memref<512x36xbf16, #tpu.memory_space<vmem>>, %arg3: memref<36x128xbf16, #tpu.memory_space<vmem>>, %arg4: memref<1x128xf32, #tpu.memory_space<vmem>>, %arg5: memref<512x128xf32, #tpu.memory_space<vmem>>, %arg6: memref<512x128xf32, #tpu.memory_space<vmem>>) attributes {dimension_semantics = [#tpu.dimension_semantics<parallel>, #tpu.dimension_semantics<arbitrary>], iteration_bounds = array<i64: 2, 1>, scalar_prefetch = 0 : i64, scratch_operands = 1 : i64, tpu.core_type = #tpu.core_type<tc>, window_params = [{transform_indices = @transform_0, window_bounds = array<i64: 512, 36>}, {pipeline_mode = #tpu.pipeline_mode<synchronous>, transform_indices = @transform_1, window_bounds = array<i64: 36, 128>}, {pipeline_mode = #tpu.pipeline_mode<synchronous>, transform_indices = @transform_2, window_bounds = array<i64: 1, 128>}, {transform_indices = @transform_3, window_bounds = array<i64: 512, 128>}]} {
    %c0_i32 = arith.constant 0 : i32
    %0 = arith.cmpi eq, %arg1, %c0_i32 : i32
    %1 = arith.extui %0 : i1 to i32
    %c0_i32_0 = arith.constant 0 : i32
    %2 = arith.cmpi ne, %1, %c0_i32_0 : i32
    scf.if %2 {
      %cst_10 = arith.constant 0.000000e+00 : f32
      %12 = vector.broadcast %cst_10 : f32 to vector<512x128xf32>
      %c0_11 = arith.constant 0 : index
      %c0_12 = arith.constant 0 : index
      %13 = vector.load %arg6[%c0_11, %c0_12] : memref<512x128xf32, #tpu.memory_space<vmem>>, vector<512x128xf32>
      tpu.vector_store %arg6[%c0_11, %c0_12], %12 {strides = array<i32>} : memref<512x128xf32, #tpu.memory_space<vmem>>, vector<512x128xf32>,
    } else {
    }
    %c0 = arith.constant 0 : index
    %c0_1 = arith.constant 0 : index
    %3 = vector.load %arg6[%c0, %c0_1] : memref<512x128xf32, #tpu.memory_space<vmem>>, vector<512x128xf32>
    %c0_2 = arith.constant 0 : index
    %c0_3 = arith.constant 0 : index
    %4 = vector.load %arg2[%c0_2, %c0_3] : memref<512x36xbf16, #tpu.memory_space<vmem>>, vector<512x36xbf16>
    %c0_4 = arith.constant 0 : index
    %c0_5 = arith.constant 0 : index
    %5 = vector.load %arg3[%c0_4, %c0_5] : memref<36x128xbf16, #tpu.memory_space<vmem>>, vector<36x128xbf16>
    %cst = arith.constant dense<0.000000e+00> : vector<512x128xf32>
    %6 = tpu.matmul %4, %5, %cst {dimension_numbers = #tpu.dot_dimension_numbers<[1], [0], [0], [1], [0, 0, 1, 1], [], []>} : vector<512x36xbf16>, vector<36x128xbf16>, vector<512x128xf32> -> vector<512x128xf32>
    %7 = arith.addf %3, %6 : vector<512x128xf32>
    %c0_6 = arith.constant 0 : index
    %c0_7 = arith.constant 0 : index
    %8 = vector.load %arg6[%c0_6, %c0_7] : memref<512x128xf32, #tpu.memory_space<vmem>>, vector<512x128xf32>
    tpu.vector_store %arg6[%c0_6, %c0_7], %7 {strides = array<i32>} : memref<512x128xf32, #tpu.memory_space<vmem>>, vector<512x128xf32>,
    %c0_i32_8 = arith.constant 0 : i32
    %9 = arith.cmpi eq, %arg1, %c0_i32_8 : i32
    %10 = arith.extui %9 : i1 to i32
    %c0_i32_9 = arith.constant 0 : i32
    %11 = arith.cmpi ne, %10, %c0_i32_9 : i32
    scf.if %11 {
      %c0_10 = arith.constant 0 : index
      %c0_11 = arith.constant 0 : index
      %12 = vector.load %arg6[%c0_10, %c0_11] : memref<512x128xf32, #tpu.memory_space<vmem>>, vector<512x128xf32>
      %c0_12 = arith.constant 0 : index
      %c0_13 = arith.constant 0 : index
      %13 = vector.load %arg4[%c0_12, %c0_13] : memref<1x128xf32, #tpu.memory_space<vmem>>, vector<1x128xf32>
      %14 = vector.broadcast %13 : vector<1x128xf32> to vector<512x128xf32>
      %15 = arith.addf %12, %14 : vector<512x128xf32>
      %cst_14 = arith.constant 0.00999999977 : f32
      %16 = vector.broadcast %cst_14 : f32 to vector<512x128xf32>
      %17 = arith.mulf %16, %15 : vector<512x128xf32>
      %18 = arith.maximumf %15, %17 : vector<512x128xf32>
      %c0_15 = arith.constant 0 : index
      %c0_16 = arith.constant 0 : index
      %19 = vector.load %arg5[%c0_15, %c0_16] : memref<512x128xf32, #tpu.memory_space<vmem>>, vector<512x128xf32>
      tpu.vector_store %arg5[%c0_15, %c0_16], %18 {strides = array<i32>} : memref<512x128xf32, #tpu.memory_space<vmem>>, vector<512x128xf32>,
    } else {
    }
    return
  }
  func.func @transform_0(%arg0: i32, %arg1: i32) -> (i32, i32) {
    %c0_i32 = arith.constant 0 : i32
    return %arg0, %arg1 : i32, i32
  }
  func.func @transform_1(%arg0: i32, %arg1: i32) -> (i32, i32) {
    %c0_i32 = arith.constant 0 : i32
    %c0_i32_0 = arith.constant 0 : i32
    return %arg1, %c0_i32 : i32, i32
  }
  func.func @transform_2(%arg0: i32, %arg1: i32) -> (i32, i32) {
    %c0_i32 = arith.constant 0 : i32
    %c0_i32_0 = arith.constant 0 : i32
    %c0_i32_1 = arith.constant 0 : i32
    return %c0_i32, %c0_i32_0 : i32, i32
  }
  func.func @transform_3(%arg0: i32, %arg1: i32) -> (i32, i32) {
    %c0_i32 = arith.constant 0 : i32
    %c0_i32_0 = arith.constant 0 : i32
    return %arg0, %c0_i32 : i32, i32
  }
}

</mosaic_0001>

<bundles_post_ra>
// kernel: tpu_custom_call.1
= control target key start
LH: loop header
LB: loop body
LE: loop exit
PB: predicated region body
PF: predicated region fallthrough
CT: control target
= control target key end

     0   :  { %8 = vsyncpa [#allocation4], 0  ;;  %s2264_s0 = inlined_call_operand.vmem [shape: bf16[1024,36], index: 0, kind: input, shape index: {}]   ;;  %s2265_s1 = inlined_call_operand.vmem [shape: bf16[36,128], index: 1, kind: input, shape index: {}]   ;;  %s2266_s2 = inlined_call_operand.vmem [shape: f32[1,128], index: 2, kind: input, shape index: {}]   ;;  %s2267_s3 = inlined_call_operand.hbm [shape: f32[1024,128], index: 3, kind: output, shape index: {}]  }
   0x1   :  { %10 = vsyncpa [#allocation4 + $0x1], 0  ;;  %s1935_s12 = smov 0   ;;  %s1937_s13 = smov 0  }
   0x2   :  { %s1939_s14 = smov 0   ;;  %s1941_s15 = smov 0  }
   0x3   :  { %s1943_s16 = smov 0   ;;  %s1945_s17 = smov 0  }
   0x4 LB: > { %s1544_s18 = sadd.s32 4294967295, %s1910_s17   ;;  %s1545_s19 = sadd.s32 4294967294, %s1910_s17   ;;  %s1910_s17 = sphi %s1945_s17, %s16_s17   ;;  %s1906_s16 = sphi %s1943_s16, %s2274_s16   ;;  %s1902_s15 = sphi %s1941_s15, %s2273_s15   ;;  %s1898_s14 = sphi %s1939_s14, %s2272_s14   ;;  %s1894_s13 = sphi %s1937_s13, %s2271_s13   ;;  %s1890_s12 = sphi %s1935_s12, %s2270_s12  }
   0x5   : > { %s28_s20 = sadd.s32 1, %s1906_s16  ;;  %s110_s21 = sadd.s32 1, %s1898_s14 }
   0x6   : > { %p30_p0 = scmp.ge.s32.totalorder %s28_s20, 2  ;;  %p120_p1 = scmp.ne.s32.totalorder %s1898_s14, %s1894_s13 }
   0x7   : > { %p121_p2 = scmp.eq.s32.totalorder %s1544_s18, 1  ;;  %p126_p3 = scmp.ne.s32.totalorder %s1894_s13, %s1890_s12 }
   0x8   : > { %s2276_s20 = smov (%p30_p0, %s28_s20), 0  ;;  %p127_p5 = scmp.eq.s32.totalorder %s1545_s19, 1 }
   0x9   : > { %p1975_p4 = por %p121_p2, %p120_p1  ;;  %s107_s23 = ssub.s32 %s1906_s16, %s2276_s20 }
   0xa   : > { %p1549_p6 = scmp.ge.s32.totalorder %s1910_s17, 1  ;;  %p108_p7 = scmp.eq.s32.totalorder %s107_s23, 0 }
   0xb   : > { %p1982_p8 = por %p127_p5, %p126_p3  ;;  %p169_p9 = scmp.lt.s32.totalorder %s1910_s17, 3 }
   0xc   : > { %s1988_s25 = scalar_select %p108_p7, %s1898_s14, %s110_s21  }
   0xd   : > { %p170_p10 = pnand %p1549_p6, %p169_p9 }
   0xe   : > { %v1797_v0 = vld [vmem:[%s2265_s1] sm:$0xff] (!%p170_p10)   ;;  %v1798_v1 = vld [vmem:[%s2265_s1 + $0x8] sm:$0xff] (!%p170_p10)   ;;  %s1551_s30 = sshll.u32 (!%p170_p10), %s1902_s15, 6  ;;  %v1799_v2 = vld [vmem:[%s2265_s1 + $0x10] ss:$0 sps:$4 sm:$0x33] (!%p170_p10)  }
   0xf   : > { %173 = sbr.rel (%p170_p10) target bundleno = 320 (0x140), region = 32  ;;  %1662 = vmatprep.subr.bf16.mxu0 (!%p170_p10), %v1797_v0  ;;  %1732 = vmatprep.subr.bf16.mxu1 (!%p170_p10), %v1797_v0  ;;  %p202_p11 = scmp.lt.s32.totalorder (!%p170_p10), %s1551_s30, 127  ;;  %vm691_vm0 = vcmask (!%p170_p10), 1041408   ;;  %vm594_vm1 = vcmask (!%p170_p10), 293888   ;;  %v2073_v36 = vld [vmem:[%s2266_s2] ss:$0 sm:$0xff] (!%p170_p10) }
  0x10   : > { %1663 = vmatpush3.bf16.msra.mxu0 (!%p170_p10), %v1797_v0  ;;  %1735 = vmatpush3.bf16.msra.mxu1 (!%p170_p10), %v1797_v0  ;;  %v693_v3 = vsel (!%p170_p10), %vm691_vm0, %v1799_v2, 0  ;;  %s198_s10 = sand.u32 (!%p170_p10), 1, %s1894_s13   ;;  %s1626_s23 = sshll.u32 (!%p170_p10), %s1902_s15, 13 }
  0x11   : > { %1664 = vmatprep.subr.bf16.mxu0 (!%p170_p10), %v1798_v1  ;;  %1733 = vmatprep.subr.bf16.mxu1 (!%p170_p10), %v1798_v1  ;;  %s1550_s19 = sshll.u32 (!%p170_p10), %s198_s10, 9  ;;  %s2206_s28 = scalar_lea.hbm (!%p170_p10), %s2267_s3, %s1626_s23 }
  0x12   : > { %s2085_s21 = scalar_lea.vmem (!%p170_p10), [#allocation3], %s1550_s19  ;;  %s2218_s29 = scalar_lea.sflag (!%p170_p10), [#allocation4], %s198_s10 }
  0x13   : > { %s1456_s26 = sshll.u32 (!%p170_p10), %s2085_s21, 4  ;;  %s1912_s4 = smov (!%p170_p10), [#allocation3]   ;;  %s2208_s26 = int_to_ptr.vmem [resolvable:$true] %s1456_s26 }
  0x14   : > { %1665 = vmatpush3.bf16.msra.mxu0 (!%p170_p10), %v1798_v1  ;;  %1736 = vmatpush3.bf16.msra.mxu1 (!%p170_p10), %v1798_v1  ;;  %s1836_s5 = sshll.u32 (!%p170_p10), %s1912_s4, 4  ;;  %s1837_s5 = int_to_ptr.vmem [resolvable:$false] %s1836_s5 }
  0x15   : > { %1738 = vmatprep.subr.msk.bf16.mxu0 (!%p170_p10), %vm691_vm0, %v1799_v2  ;;  %1739 = vmatprep.subr.msk.bf16.mxu1 (!%p170_p10), %vm691_vm0, %v1799_v2  ;;  %p1839_p1 = scmp.lt.s32.totalorder (!%p170_p10), %s2208_s26, %s1837_s5 }
  0x16   : > { %s2278_s30 = smov (!%p202_p11, %s1551_s30), 127 }
  0x17   : > { %s1552_s6 = sshll.u32 %s2278_s30, 2  ;;  %s1832_s30 = scalar_lea.vmem %s2208_s26, 8192 }
  0x18   : > { %s2003_s9 = scalar_lea.vmem %s2264_s0, %s1552_s6  ;;  %1667 = vmatpush3.bf16.msra.mxu0 %v693_v3  ;;  %1737 = vmatpush3.bf16.msra.mxu1 %v693_v3  ;;  %p1833_p12 = scmp.ne.s32.totalorder %s2208_s26, %s1832_s30 }
  0x19   : > { %v1800_v4 = vld [vmem:[%s2003_s9] sm:$0xff]   ;;  %v1802_v6 = vld [vmem:[%s2003_s9 + $0x8] sm:$0xff]   ;;  %v1804_v8 = vld [vmem:[%s2003_s9 + $0x10] sm:$0xff]   ;;  %s1838_s6 = scalar_lea.vmem %s1837_s5, 16384 }
  0x1a   : > { %v1801_v5 = vld [vmem:[%s2003_s9 + $0x80] sm:$0xff]   ;;  %1668 = vmatprep.mubr.msk.bf16.mxu0 %vm594_vm1, %v1800_v4  ;;  %v1803_v7 = vld [vmem:[%s2003_s9 + $0x88] sm:$0xff]   ;;  %v1805_v9 = vld [vmem:[%s2003_s9 + $0x90] sm:$0xff]   ;;  %p1834_p13 = pnand %p1833_p12, %p1975_p4  ;;  %p1840_p2 = scmp.lt.s32.totalorder %s1838_s6, %s1832_s30 }
  0x1b   : > { %1700 = vmatprep.mubr.msk.bf16.mxu1 %vm594_vm1, %v1801_v5  ;;  %1669 = vmatmul.mubr.msk.bf16.vlgmr.msra.gmra.mrb[0].mxu0 %vm594_vm1, %v1802_v6  ;;  %v1806_v10 = vld [vmem:[%s2003_s9 + $0x18] sm:$0xff]   ;;  %v1808_v12 = vld [vmem:[%s2003_s9 + $0x20] sm:$0xff]   ;;  %v1810_v14 = vld [vmem:[%s2003_s9 + $0x28] sm:$0xff]  }
  0x1c   : > { %1701 = vmatmul.mubr.msk.bf16.vlgmr.msra.gmra.mrb[0].mxu1 %vm594_vm1, %v1803_v7  ;;  %1672 = vmatprep.mubr.msk.bf16.mxu0 %vm594_vm1, %v1804_v8  ;;  %v1807_v11 = vld [vmem:[%s2003_s9 + $0x98] sm:$0xff]   ;;  %v1809_v13 = vld [vmem:[%s2003_s9 + $0xa0] sm:$0xff]   ;;  %v1811_v15 = vld [vmem:[%s2003_s9 + $0xa8] sm:$0xff]   ;;  %p1835_p0 = pneg %p1834_p13  ;;  %p1841_p3 = por %p1840_p2, %p1839_p1 }
  0x1d   : > { %1704 = vmatprep.mubr.msk.bf16.mxu1 %vm594_vm1, %v1805_v9  ;;  %v1812_v16 = vld [vmem:[%s2003_s9 + $0x30] sm:$0xff]   ;;  %v1814_v18 = vld [vmem:[%s2003_s9 + $0x38] sm:$0xff]   ;;  %v1816_v20 = vld [vmem:[%s2003_s9 + $0x40] sm:$0xff]  }
  0x1e   : > { %v1813_v17 = vld [vmem:[%s2003_s9 + $0xb0] sm:$0xff]   ;;  %v1815_v19 = vld [vmem:[%s2003_s9 + $0xb8] sm:$0xff]   ;;  %v1817_v21 = vld [vmem:[%s2003_s9 + $0xc0] sm:$0xff]   ;;  %p1842_p5 = pnand %p1841_p3, %p1835_p0 }
  0x1f   : > { %v1818_v22 = vld [vmem:[%s2003_s9 + $0x48] sm:$0xff]   ;;  %v1820_v24 = vld [vmem:[%s2003_s9 + $0x50] sm:$0xff]   ;;  %v1822_v26 = vld [vmem:[%s2003_s9 + $0x58] sm:$0xff]  }
  0x20   : > { %v1819_v23 = vld [vmem:[%s2003_s9 + $0xc8] sm:$0xff]   ;;  %v1821_v25 = vld [vmem:[%s2003_s9 + $0xd0] sm:$0xff]   ;;  %v1823_v27 = vld [vmem:[%s2003_s9 + $0xd8] sm:$0xff]  }
  0x21   : > { %v1824_v28 = vld [vmem:[%s2003_s9 + $0x60] sm:$0xff]   ;;  %v1826_v30 = vld [vmem:[%s2003_s9 + $0x68] sm:$0xff]   ;;  %v1828_v32 = vld [vmem:[%s2003_s9 + $0x70] sm:$0xff]  }
  0x22   : > { %v1825_v29 = vld [vmem:[%s2003_s9 + $0xe0] sm:$0xff]   ;;  %v1827_v31 = vld [vmem:[%s2003_s9 + $0xe8] sm:$0xff]   ;;  %v1829_v33 = vld [vmem:[%s2003_s9 + $0xf0] sm:$0xff]  }
  0x23   : > { %1673 = vmatmul.mubr.msk.bf16.gmra.mrb[4].mxu0 %vm594_vm1, %v1806_v10  ;;  %v1830_v34 = vld [vmem:[%s2003_s9 + $0x78] sm:$0xff]  }
  0x24   : > { %1705 = vmatmul.mubr.msk.bf16.gmra.mrb[4].mxu1 %vm594_vm1, %v1807_v11  ;;  %1676 = vmatprep.mubr.msk.bf16.mxu0 %vm594_vm1, %v1808_v12  ;;  %v1831_v35 = vld [vmem:[%s2003_s9 + $0xf8] sm:$0xff]  }
  0x25   : > { %1708 = vmatprep.mubr.msk.bf16.mxu1 %vm594_vm1, %v1809_v13 }
  0x2b   : > { %1677 = vmatmul.mubr.msk.bf16.gmra.mrb[8].mxu0 %vm594_vm1, %v1810_v14 }
  0x2c   : > { %1709 = vmatmul.mubr.msk.bf16.gmra.mrb[8].mxu1 %vm594_vm1, %v1811_v15  ;;  %1680 = vmatprep.mubr.msk.bf16.mxu0 %vm594_vm1, %v1812_v16 }
  0x2d   : > { %1712 = vmatprep.mubr.msk.bf16.mxu1 %vm594_vm1, %v1813_v17 }
  0x33   : > { %1681 = vmatmul.mubr.msk.bf16.gmra.mrb[12].mxu0 %vm594_vm1, %v1814_v18 }
  0x34   : > { %1713 = vmatmul.mubr.msk.bf16.gmra.mrb[12].mxu1 %vm594_vm1, %v1815_v19  ;;  %1684 = vmatprep.mubr.msk.bf16.mxu0 %vm594_vm1, %v1816_v20 }
  0x35   : > { %1716 = vmatprep.mubr.msk.bf16.mxu1 %vm594_vm1, %v1817_v21 }
  0x3b   : > { %1685 = vmatmul.mubr.msk.bf16.gmra.mrb[16].mxu0 %vm594_vm1, %v1818_v22 }
  0x3c   : > { %1717 = vmatmul.mubr.msk.bf16.gmra.mrb[16].mxu1 %vm594_vm1, %v1819_v23  ;;  %1688 = vmatprep.mubr.msk.bf16.mxu0 %vm594_vm1, %v1820_v24 }
  0x3d   : > { %1720 = vmatprep.mubr.msk.bf16.mxu1 %vm594_vm1, %v1821_v25 }
  0x43   : > { %1689 = vmatmul.mubr.msk.bf16.gmra.mrb[20].mxu0 %vm594_vm1, %v1822_v26 }
  0x44   : > { %1721 = vmatmul.mubr.msk.bf16.gmra.mrb[20].mxu1 %vm594_vm1, %v1823_v27  ;;  %1692 = vmatprep.mubr.msk.bf16.mxu0 %vm594_vm1, %v1824_v28 }
  0x45   : > { %1724 = vmatprep.mubr.msk.bf16.mxu1 %vm594_vm1, %v1825_v29 }
  0x4b   : > { %1693 = vmatmul.mubr.msk.bf16.gmra.mrb[24].mxu0 %vm594_vm1, %v1826_v30 }
  0x4c   : > { %1725 = vmatmul.mubr.msk.bf16.gmra.mrb[24].mxu1 %vm594_vm1, %v1827_v31  ;;  %1696 = vmatprep.mubr.msk.bf16.mxu0 %vm594_vm1, %v1828_v32 }
  0x4d   : > { %1728 = vmatprep.mubr.msk.bf16.mxu1 %vm594_vm1, %v1829_v33 }
  0x53   : > { %1697 = vmatmul.mubr.msk.bf16.gmra.mrb[28].mxu0 %vm594_vm1, %v1830_v34 }
  0x54   : > { %1729 = vmatmul.mubr.msk.bf16.gmra.mrb[28].mxu1 %vm594_vm1, %v1831_v35 }
  0xee   : > { %v1670_v37 = vpop.f32.mrb[0].mxu0 }
  0xef   : > { %v1702_v38 = vpop.f32.mrb[0].mxu1  ;;  %v1188_v39 = vadd.f32 %v1670_v37, %v2073_v36  ;;  %v729_v41 = vpop.f32.mrb[1].mxu0 }
  0xf0   : > { %v1220_v40 = vadd.f32 %v1702_v38, %v2073_v36  ;;  %v857_v42 = vpop.f32.mrb[1].mxu1  ;;  %v1186_v43 = vadd.f32 %v2073_v36, %v729_v41  ;;  %v1671_v45 = vpop.f32.mrb[2].mxu0 }
  0xf1   : > { %v1218_v44 = vadd.f32 %v2073_v36, %v857_v42  ;;  %v1703_v46 = vpop.f32.mrb[2].mxu1  ;;  %v1252_v47 = vmul.f32 0.01, %v1188_v39  ;;  %v1189_v49 = vadd.f32 %v1671_v45, %v2073_v36  ;;  %v732_v51 = vpop.f32.mrb[3].mxu0 }
  0xf2   : > { %v1284_v48 = vmul.f32 0.01, %v1220_v40  ;;  %v1221_v50 = vadd.f32 %v1703_v46, %v2073_v36  ;;  %v860_v52 = vpop.f32.mrb[3].mxu1  ;;  %v1250_v53 = vmul.f32 0.01, %v1186_v43  ;;  %v1187_v55 = vadd.f32 %v2073_v36, %v732_v51 }
  0xf3   : > { %v1282_v54 = vmul.f32 0.01, %v1218_v44  ;;  %v1219_v56 = vadd.f32 %v2073_v36, %v860_v52  ;;  %v1316_v57 = vmax.f32 %v1188_v39, %v1252_v47  ;;  %v1253_v59 = vmul.f32 0.01, %v1189_v49 }
  0xf4   : > { %v1348_v58 = vmax.f32 %v1220_v40, %v1284_v48  ;;  %v1285_v60 = vmul.f32 0.01, %v1221_v50  ;;  %v1314_v61 = vmax.f32 %v1186_v43, %v1250_v53  ;;  %v1251_v63 = vmul.f32 0.01, %v1187_v55 }
  0xf5   : > { %v1346_v62 = vmax.f32 %v1218_v44, %v1282_v54  ;;  %v1283_v0 = vmul.f32 0.01, %v1219_v56  ;;  %1380 = vst [vmem:[%s2085_s21 + $0x10] sm:$0xff] %v1316_v57  ;;  %v1317_v1 = vmax.f32 %v1189_v49, %v1253_v59 }
  0xf6   : > { %1412 = vst [vmem:[%s2085_s21 + $0x110] sm:$0xff] %v1348_v58  ;;  %v1349_v2 = vmax.f32 %v1221_v50, %v1285_v60  ;;  %1378 = vst [vmem:[%s2085_s21] sm:$0xff] %v1314_v61  ;;  %v1315_v3 = vmax.f32 %v1187_v55, %v1251_v63  ;;  %v1674_v5 = vpop.f32.mrb[4].mxu0 }
  0xf7   : > { %1410 = vst [vmem:[%s2085_s21 + $0x100] sm:$0xff] %v1346_v62  ;;  %v1347_v4 = vmax.f32 %v1219_v56, %v1283_v0  ;;  %v1706_v6 = vpop.f32.mrb[4].mxu1  ;;  %1381 = vst [vmem:[%s2085_s21 + $0x18] sm:$0xff] %v1317_v1  ;;  %v1192_v7 = vadd.f32 %v1674_v5, %v2073_v36  ;;  %v745_v9 = vpop.f32.mrb[5].mxu0 }
  0xf8   : > { %1413 = vst [vmem:[%s2085_s21 + $0x118] sm:$0xff] %v1349_v2  ;;  %v1224_v8 = vadd.f32 %v1706_v6, %v2073_v36  ;;  %v873_v10 = vpop.f32.mrb[5].mxu1  ;;  %1379 = vst [vmem:[%s2085_s21 + $0x8] sm:$0xff] %v1315_v3  ;;  %v1190_v11 = vadd.f32 %v2073_v36, %v745_v9  ;;  %v1675_v13 = vpop.f32.mrb[6].mxu0 }
  0xf9   : > { %1411 = vst [vmem:[%s2085_s21 + $0x108] sm:$0xff] %v1347_v4  ;;  %v1222_v12 = vadd.f32 %v2073_v36, %v873_v10  ;;  %v1707_v14 = vpop.f32.mrb[6].mxu1  ;;  %v1256_v15 = vmul.f32 0.01, %v1192_v7  ;;  %v1193_v17 = vadd.f32 %v1675_v13, %v2073_v36  ;;  %v748_v19 = vpop.f32.mrb[7].mxu0 }
  0xfa   : > { %v1288_v16 = vmul.f32 0.01, %v1224_v8  ;;  %v1225_v18 = vadd.f32 %v1707_v14, %v2073_v36  ;;  %v876_v20 = vpop.f32.mrb[7].mxu1  ;;  %v1254_v21 = vmul.f32 0.01, %v1190_v11  ;;  %v1191_v23 = vadd.f32 %v2073_v36, %v748_v19 }
  0xfb   : > { %v1286_v22 = vmul.f32 0.01, %v1222_v12  ;;  %v1223_v24 = vadd.f32 %v2073_v36, %v876_v20  ;;  %v1320_v25 = vmax.f32 %v1192_v7, %v1256_v15  ;;  %v1257_v27 = vmul.f32 0.01, %v1193_v17 }
  0xfc   : > { %v1352_v26 = vmax.f32 %v1224_v8, %v1288_v16  ;;  %v1289_v28 = vmul.f32 0.01, %v1225_v18  ;;  %v1318_v29 = vmax.f32 %v1190_v11, %v1254_v21  ;;  %v1255_v31 = vmul.f32 0.01, %v1191_v23 }
  0xfd   : > { %v1350_v30 = vmax.f32 %v1222_v12, %v1286_v22  ;;  %v1287_v32 = vmul.f32 0.01, %v1223_v24  ;;  %1384 = vst [vmem:[%s2085_s21 + $0x30] sm:$0xff] %v1320_v25  ;;  %v1321_v33 = vmax.f32 %v1193_v17, %v1257_v27 }
  0xfe   : > { %1416 = vst [vmem:[%s2085_s21 + $0x130] sm:$0xff] %v1352_v26  ;;  %v1353_v34 = vmax.f32 %v1225_v18, %v1289_v28  ;;  %1382 = vst [vmem:[%s2085_s21 + $0x20] sm:$0xff] %v1318_v29  ;;  %v1319_v35 = vmax.f32 %v1191_v23, %v1255_v31  ;;  %v1678_v38 = vpop.f32.mrb[8].mxu0 }
  0xff   : > { %1414 = vst [vmem:[%s2085_s21 + $0x120] sm:$0xff] %v1350_v30  ;;  %v1351_v37 = vmax.f32 %v1223_v24, %v1287_v32  ;;  %v1710_v39 = vpop.f32.mrb[8].mxu1  ;;  %1385 = vst [vmem:[%s2085_s21 + $0x38] sm:$0xff] %v1321_v33  ;;  %v1196_v40 = vadd.f32 %v1678_v38, %v2073_v36  ;;  %v761_v42 = vpop.f32.mrb[9].mxu0 }
 0x100   : > { %1417 = vst [vmem:[%s2085_s21 + $0x138] sm:$0xff] %v1353_v34  ;;  %v1228_v41 = vadd.f32 %v1710_v39, %v2073_v36  ;;  %v889_v43 = vpop.f32.mrb[9].mxu1  ;;  %1383 = vst [vmem:[%s2085_s21 + $0x28] sm:$0xff] %v1319_v35  ;;  %v1194_v44 = vadd.f32 %v2073_v36, %v761_v42  ;;  %v1679_v46 = vpop.f32.mrb[10].mxu0 }
 0x101   : > { %1415 = vst [vmem:[%s2085_s21 + $0x128] sm:$0xff] %v1351_v37  ;;  %v1226_v45 = vadd.f32 %v2073_v36, %v889_v43  ;;  %v1711_v47 = vpop.f32.mrb[10].mxu1  ;;  %v1260_v48 = vmul.f32 0.01, %v1196_v40  ;;  %v1197_v50 = vadd.f32 %v1679_v46, %v2073_v36  ;;  %v764_v52 = vpop.f32.mrb[11].mxu0 }
 0x102   : > { %v1292_v49 = vmul.f32 0.01, %v1228_v41  ;;  %v1229_v51 = vadd.f32 %v1711_v47, %v2073_v36  ;;  %v892_v53 = vpop.f32.mrb[11].mxu1  ;;  %v1258_v54 = vmul.f32 0.01, %v1194_v44  ;;  %v1195_v56 = vadd.f32 %v2073_v36, %v764_v52 }
 0x103   : > { %v1290_v55 = vmul.f32 0.01, %v1226_v45  ;;  %v1227_v57 = vadd.f32 %v2073_v36, %v892_v53  ;;  %v1324_v58 = vmax.f32 %v1196_v40, %v1260_v48  ;;  %v1261_v60 = vmul.f32 0.01, %v1197_v50 }
 0x104   : > { %v1356_v59 = vmax.f32 %v1228_v41, %v1292_v49  ;;  %v1293_v61 = vmul.f32 0.01, %v1229_v51  ;;  %v1322_v62 = vmax.f32 %v1194_v44, %v1258_v54  ;;  %v1259_v0 = vmul.f32 0.01, %v1195_v56 }
 0x105   : > { %v1354_v63 = vmax.f32 %v1226_v45, %v1290_v55  ;;  %v1291_v1 = vmul.f32 0.01, %v1227_v57  ;;  %1388 = vst [vmem:[%s2085_s21 + $0x50] sm:$0xff] %v1324_v58  ;;  %v1325_v2 = vmax.f32 %v1197_v50, %v1261_v60 }
 0x106   : > { %1420 = vst [vmem:[%s2085_s21 + $0x150] sm:$0xff] %v1356_v59  ;;  %v1357_v3 = vmax.f32 %v1229_v51, %v1293_v61  ;;  %1386 = vst [vmem:[%s2085_s21 + $0x40] sm:$0xff] %v1322_v62  ;;  %v1323_v4 = vmax.f32 %v1195_v56, %v1259_v0  ;;  %v1682_v6 = vpop.f32.mrb[12].mxu0 }
 0x107   : > { %1418 = vst [vmem:[%s2085_s21 + $0x140] sm:$0xff] %v1354_v63  ;;  %v1355_v5 = vmax.f32 %v1227_v57, %v1291_v1  ;;  %v1714_v7 = vpop.f32.mrb[12].mxu1  ;;  %1389 = vst [vmem:[%s2085_s21 + $0x58] sm:$0xff] %v1325_v2  ;;  %v1200_v8 = vadd.f32 %v1682_v6, %v2073_v36  ;;  %v777_v10 = vpop.f32.mrb[13].mxu0 }
 0x108   : > { %1421 = vst [vmem:[%s2085_s21 + $0x158] sm:$0xff] %v1357_v3  ;;  %v1232_v9 = vadd.f32 %v1714_v7, %v2073_v36  ;;  %v905_v11 = vpop.f32.mrb[13].mxu1  ;;  %1387 = vst [vmem:[%s2085_s21 + $0x48] sm:$0xff] %v1323_v4  ;;  %v1198_v12 = vadd.f32 %v2073_v36, %v777_v10  ;;  %v1683_v14 = vpop.f32.mrb[14].mxu0 }
 0x109   : > { %1419 = vst [vmem:[%s2085_s21 + $0x148] sm:$0xff] %v1355_v5  ;;  %v1230_v13 = vadd.f32 %v2073_v36, %v905_v11  ;;  %v1715_v15 = vpop.f32.mrb[14].mxu1  ;;  %v1264_v16 = vmul.f32 0.01, %v1200_v8  ;;  %v1201_v18 = vadd.f32 %v1683_v14, %v2073_v36  ;;  %v780_v20 = vpop.f32.mrb[15].mxu0 }
 0x10a   : > { %v1296_v17 = vmul.f32 0.01, %v1232_v9  ;;  %v1233_v19 = vadd.f32 %v1715_v15, %v2073_v36  ;;  %v908_v21 = vpop.f32.mrb[15].mxu1  ;;  %v1262_v22 = vmul.f32 0.01, %v1198_v12  ;;  %v1199_v24 = vadd.f32 %v2073_v36, %v780_v20 }
 0x10b   : > { %v1294_v23 = vmul.f32 0.01, %v1230_v13  ;;  %v1231_v25 = vadd.f32 %v2073_v36, %v908_v21  ;;  %v1328_v26 = vmax.f32 %v1200_v8, %v1264_v16  ;;  %v1265_v28 = vmul.f32 0.01, %v1201_v18 }
 0x10c   : > { %v1360_v27 = vmax.f32 %v1232_v9, %v1296_v17  ;;  %v1297_v29 = vmul.f32 0.01, %v1233_v19  ;;  %v1326_v30 = vmax.f32 %v1198_v12, %v1262_v22  ;;  %v1263_v32 = vmul.f32 0.01, %v1199_v24 }
 0x10d   : > { %v1358_v31 = vmax.f32 %v1230_v13, %v1294_v23  ;;  %v1295_v33 = vmul.f32 0.01, %v1231_v25  ;;  %1392 = vst [vmem:[%s2085_s21 + $0x70] sm:$0xff] %v1328_v26  ;;  %v1329_v34 = vmax.f32 %v1201_v18, %v1265_v28 }
 0x10e   : > { %1424 = vst [vmem:[%s2085_s21 + $0x170] sm:$0xff] %v1360_v27  ;;  %v1361_v35 = vmax.f32 %v1233_v19, %v1297_v29  ;;  %1390 = vst [vmem:[%s2085_s21 + $0x60] sm:$0xff] %v1326_v30  ;;  %v1327_v37 = vmax.f32 %v1199_v24, %v1263_v32  ;;  %v1686_v39 = vpop.f32.mrb[16].mxu0 }
 0x10f   : > { %1422 = vst [vmem:[%s2085_s21 + $0x160] sm:$0xff] %v1358_v31  ;;  %v1359_v38 = vmax.f32 %v1231_v25, %v1295_v33  ;;  %v1718_v40 = vpop.f32.mrb[16].mxu1  ;;  %1393 = vst [vmem:[%s2085_s21 + $0x78] sm:$0xff] %v1329_v34  ;;  %v1204_v41 = vadd.f32 %v1686_v39, %v2073_v36  ;;  %v793_v43 = vpop.f32.mrb[17].mxu0 }
 0x110   : > { %1425 = vst [vmem:[%s2085_s21 + $0x178] sm:$0xff] %v1361_v35  ;;  %v1236_v42 = vadd.f32 %v1718_v40, %v2073_v36  ;;  %v921_v44 = vpop.f32.mrb[17].mxu1  ;;  %1391 = vst [vmem:[%s2085_s21 + $0x68] sm:$0xff] %v1327_v37  ;;  %v1202_v45 = vadd.f32 %v2073_v36, %v793_v43  ;;  %v1687_v47 = vpop.f32.mrb[18].mxu0 }
 0x111   : > { %1423 = vst [vmem:[%s2085_s21 + $0x168] sm:$0xff] %v1359_v38  ;;  %v1234_v46 = vadd.f32 %v2073_v36, %v921_v44  ;;  %v1719_v48 = vpop.f32.mrb[18].mxu1  ;;  %v1268_v49 = vmul.f32 0.01, %v1204_v41  ;;  %v1205_v51 = vadd.f32 %v1687_v47, %v2073_v36  ;;  %v796_v53 = vpop.f32.mrb[19].mxu0 }
 0x112   : > { %v1300_v50 = vmul.f32 0.01, %v1236_v42  ;;  %v1237_v52 = vadd.f32 %v1719_v48, %v2073_v36  ;;  %v924_v54 = vpop.f32.mrb[19].mxu1  ;;  %v1266_v55 = vmul.f32 0.01, %v1202_v45  ;;  %v1203_v57 = vadd.f32 %v2073_v36, %v796_v53 }
 0x113   : > { %v1298_v56 = vmul.f32 0.01, %v1234_v46  ;;  %v1235_v58 = vadd.f32 %v2073_v36, %v924_v54  ;;  %v1332_v59 = vmax.f32 %v1204_v41, %v1268_v49  ;;  %v1269_v61 = vmul.f32 0.01, %v1205_v51 }
 0x114   : > { %v1364_v60 = vmax.f32 %v1236_v42, %v1300_v50  ;;  %v1301_v62 = vmul.f32 0.01, %v1237_v52  ;;  %v1330_v63 = vmax.f32 %v1202_v45, %v1266_v55  ;;  %v1267_v1 = vmul.f32 0.01, %v1203_v57 }
 0x115   : > { %v1362_v0 = vmax.f32 %v1234_v46, %v1298_v56  ;;  %v1299_v2 = vmul.f32 0.01, %v1235_v58  ;;  %1396 = vst [vmem:[%s2085_s21 + $0x90] sm:$0xff] %v1332_v59  ;;  %v1333_v3 = vmax.f32 %v1205_v51, %v1269_v61 }
 0x116   : > { %1428 = vst [vmem:[%s2085_s21 + $0x190] sm:$0xff] %v1364_v60  ;;  %v1365_v4 = vmax.f32 %v1237_v52, %v1301_v62  ;;  %1394 = vst [vmem:[%s2085_s21 + $0x80] sm:$0xff] %v1330_v63  ;;  %v1331_v5 = vmax.f32 %v1203_v57, %v1267_v1  ;;  %v1690_v7 = vpop.f32.mrb[20].mxu0 }
 0x117   : > { %1426 = vst [vmem:[%s2085_s21 + $0x180] sm:$0xff] %v1362_v0  ;;  %v1363_v6 = vmax.f32 %v1235_v58, %v1299_v2  ;;  %v1722_v8 = vpop.f32.mrb[20].mxu1  ;;  %1397 = vst [vmem:[%s2085_s21 + $0x98] sm:$0xff] %v1333_v3  ;;  %v1208_v9 = vadd.f32 %v1690_v7, %v2073_v36  ;;  %v809_v11 = vpop.f32.mrb[21].mxu0 }
 0x118   : > { %1429 = vst [vmem:[%s2085_s21 + $0x198] sm:$0xff] %v1365_v4  ;;  %v1240_v10 = vadd.f32 %v1722_v8, %v2073_v36  ;;  %v937_v12 = vpop.f32.mrb[21].mxu1  ;;  %1395 = vst [vmem:[%s2085_s21 + $0x88] sm:$0xff] %v1331_v5  ;;  %v1206_v13 = vadd.f32 %v2073_v36, %v809_v11  ;;  %v1691_v15 = vpop.f32.mrb[22].mxu0 }
 0x119   : > { %1427 = vst [vmem:[%s2085_s21 + $0x188] sm:$0xff] %v1363_v6  ;;  %v1238_v14 = vadd.f32 %v2073_v36, %v937_v12  ;;  %v1723_v16 = vpop.f32.mrb[22].mxu1  ;;  %v1272_v17 = vmul.f32 0.01, %v1208_v9  ;;  %v1209_v19 = vadd.f32 %v1691_v15, %v2073_v36  ;;  %v812_v21 = vpop.f32.mrb[23].mxu0 }
 0x11a   : > { %v1304_v18 = vmul.f32 0.01, %v1240_v10  ;;  %v1241_v20 = vadd.f32 %v1723_v16, %v2073_v36  ;;  %v940_v22 = vpop.f32.mrb[23].mxu1  ;;  %v1270_v23 = vmul.f32 0.01, %v1206_v13  ;;  %v1207_v25 = vadd.f32 %v2073_v36, %v812_v21 }
 0x11b   : > { %v1302_v24 = vmul.f32 0.01, %v1238_v14  ;;  %v1239_v26 = vadd.f32 %v2073_v36, %v940_v22  ;;  %v1336_v27 = vmax.f32 %v1208_v9, %v1272_v17  ;;  %v1273_v29 = vmul.f32 0.01, %v1209_v19 }
 0x11c   : > { %v1368_v28 = vmax.f32 %v1240_v10, %v1304_v18  ;;  %v1305_v30 = vmul.f32 0.01, %v1241_v20  ;;  %v1334_v31 = vmax.f32 %v1206_v13, %v1270_v23  ;;  %v1271_v33 = vmul.f32 0.01, %v1207_v25 }
 0x11d   : > { %v1366_v32 = vmax.f32 %v1238_v14, %v1302_v24  ;;  %v1303_v34 = vmul.f32 0.01, %v1239_v26  ;;  %1400 = vst [vmem:[%s2085_s21 + $0xb0] sm:$0xff] %v1336_v27  ;;  %v1337_v35 = vmax.f32 %v1209_v19, %v1273_v29 }
 0x11e   : > { %1432 = vst [vmem:[%s2085_s21 + $0x1b0] sm:$0xff] %v1368_v28  ;;  %v1369_v37 = vmax.f32 %v1241_v20, %v1305_v30  ;;  %1398 = vst [vmem:[%s2085_s21 + $0xa0] sm:$0xff] %v1334_v31  ;;  %v1335_v38 = vmax.f32 %v1207_v25, %v1271_v33  ;;  %v1694_v40 = vpop.f32.mrb[24].mxu0 }
 0x11f   : > { %1430 = vst [vmem:[%s2085_s21 + $0x1a0] sm:$0xff] %v1366_v32  ;;  %v1367_v39 = vmax.f32 %v1239_v26, %v1303_v34  ;;  %v1726_v41 = vpop.f32.mrb[24].mxu1  ;;  %1401 = vst [vmem:[%s2085_s21 + $0xb8] sm:$0xff] %v1337_v35  ;;  %v1212_v42 = vadd.f32 %v1694_v40, %v2073_v36  ;;  %v825_v44 = vpop.f32.mrb[25].mxu0 }
 0x120   : > { %1433 = vst [vmem:[%s2085_s21 + $0x1b8] sm:$0xff] %v1369_v37  ;;  %v1244_v43 = vadd.f32 %v1726_v41, %v2073_v36  ;;  %v953_v45 = vpop.f32.mrb[25].mxu1  ;;  %1399 = vst [vmem:[%s2085_s21 + $0xa8] sm:$0xff] %v1335_v38  ;;  %v1210_v46 = vadd.f32 %v2073_v36, %v825_v44  ;;  %v1695_v48 = vpop.f32.mrb[26].mxu0 }
 0x121   : > { %1431 = vst [vmem:[%s2085_s21 + $0x1a8] sm:$0xff] %v1367_v39  ;;  %v1242_v47 = vadd.f32 %v2073_v36, %v953_v45  ;;  %v1727_v49 = vpop.f32.mrb[26].mxu1  ;;  %v1276_v50 = vmul.f32 0.01, %v1212_v42  ;;  %v1213_v52 = vadd.f32 %v1695_v48, %v2073_v36  ;;  %v828_v54 = vpop.f32.mrb[27].mxu0 }
 0x122   : > { %v1308_v51 = vmul.f32 0.01, %v1244_v43  ;;  %v1245_v53 = vadd.f32 %v1727_v49, %v2073_v36  ;;  %v956_v55 = vpop.f32.mrb[27].mxu1  ;;  %v1274_v56 = vmul.f32 0.01, %v1210_v46  ;;  %v1211_v58 = vadd.f32 %v2073_v36, %v828_v54 }
 0x123   : > { %v1306_v57 = vmul.f32 0.01, %v1242_v47  ;;  %v1243_v59 = vadd.f32 %v2073_v36, %v956_v55  ;;  %v1340_v60 = vmax.f32 %v1212_v42, %v1276_v50  ;;  %v1277_v62 = vmul.f32 0.01, %v1213_v52 }
 0x124   : > { %v1372_v61 = vmax.f32 %v1244_v43, %v1308_v51  ;;  %v1309_v63 = vmul.f32 0.01, %v1245_v53  ;;  %v1338_v0 = vmax.f32 %v1210_v46, %v1274_v56  ;;  %v1275_v2 = vmul.f32 0.01, %v1211_v58 }
 0x125   : > { %v1370_v1 = vmax.f32 %v1242_v47, %v1306_v57  ;;  %v1307_v3 = vmul.f32 0.01, %v1243_v59  ;;  %1404 = vst [vmem:[%s2085_s21 + $0xd0] sm:$0xff] %v1340_v60  ;;  %v1341_v4 = vmax.f32 %v1213_v52, %v1277_v62 }
 0x126   : > { %1436 = vst [vmem:[%s2085_s21 + $0x1d0] sm:$0xff] %v1372_v61  ;;  %v1373_v5 = vmax.f32 %v1245_v53, %v1309_v63  ;;  %1402 = vst [vmem:[%s2085_s21 + $0xc0] sm:$0xff] %v1338_v0  ;;  %v1339_v6 = vmax.f32 %v1211_v58, %v1275_v2  ;;  %v1698_v8 = vpop.f32.mrb[28].mxu0 }
 0x127   : > { %1434 = vst [vmem:[%s2085_s21 + $0x1c0] sm:$0xff] %v1370_v1  ;;  %v1371_v7 = vmax.f32 %v1243_v59, %v1307_v3  ;;  %v1730_v9 = vpop.f32.mrb[28].mxu1  ;;  %1405 = vst [vmem:[%s2085_s21 + $0xd8] sm:$0xff] %v1341_v4  ;;  %v1216_v10 = vadd.f32 %v1698_v8, %v2073_v36  ;;  %v841_v12 = vpop.f32.mrb[29].mxu0 }
 0x128   : > { %1437 = vst [vmem:[%s2085_s21 + $0x1d8] sm:$0xff] %v1373_v5  ;;  %v1248_v11 = vadd.f32 %v1730_v9, %v2073_v36  ;;  %v969_v13 = vpop.f32.mrb[29].mxu1  ;;  %1403 = vst [vmem:[%s2085_s21 + $0xc8] sm:$0xff] %v1339_v6  ;;  %v1214_v14 = vadd.f32 %v2073_v36, %v841_v12  ;;  %v1699_v16 = vpop.f32.mrb[30].mxu0 }
 0x129   : > { %1435 = vst [vmem:[%s2085_s21 + $0x1c8] sm:$0xff] %v1371_v7  ;;  %v1246_v15 = vadd.f32 %v2073_v36, %v969_v13  ;;  %v1731_v17 = vpop.f32.mrb[30].mxu1  ;;  %v1280_v18 = vmul.f32 0.01, %v1216_v10  ;;  %v1217_v20 = vadd.f32 %v1699_v16, %v2073_v36  ;;  %v844_v22 = vpop.f32.mrb[31].mxu0 }
 0x12a   : > { %v1312_v19 = vmul.f32 0.01, %v1248_v11  ;;  %v1249_v21 = vadd.f32 %v1731_v17, %v2073_v36  ;;  %v972_v23 = vpop.f32.mrb[31].mxu1  ;;  %v1278_v24 = vmul.f32 0.01, %v1214_v14  ;;  %v1215_v26 = vadd.f32 %v2073_v36, %v844_v22 }
 0x12b   : > { %v1310_v25 = vmul.f32 0.01, %v1246_v15  ;;  %v1247_v27 = vadd.f32 %v2073_v36, %v972_v23  ;;  %v1344_v28 = vmax.f32 %v1216_v10, %v1280_v18  ;;  %v1281_v30 = vmul.f32 0.01, %v1217_v20 }
 0x12c   : > { %v1376_v29 = vmax.f32 %v1248_v11, %v1312_v19  ;;  %v1313_v31 = vmul.f32 0.01, %v1249_v21  ;;  %v1342_v32 = vmax.f32 %v1214_v14, %v1278_v24  ;;  %v1279_v34 = vmul.f32 0.01, %v1215_v26 }
 0x12d   : > { %v1374_v33 = vmax.f32 %v1246_v15, %v1310_v25  ;;  %v1311_v35 = vmul.f32 0.01, %v1247_v27  ;;  %1408 = vst [vmem:[%s2085_s21 + $0xf0] sm:$0xff] %v1344_v28  ;;  %v1345_v36 = vmax.f32 %v1217_v20, %v1281_v30 }
 0x12e   : > { %1440 = vst [vmem:[%s2085_s21 + $0x1f0] sm:$0xff] %v1376_v29  ;;  %v1377_v37 = vmax.f32 %v1249_v21, %v1313_v31  ;;  %1406 = vst [vmem:[%s2085_s21 + $0xe0] sm:$0xff] %v1342_v32  ;;  %v1343_v38 = vmax.f32 %v1215_v26, %v1279_v34 }
 0x12f   : > { %1438 = vst [vmem:[%s2085_s21 + $0x1e0] sm:$0xff] %v1374_v33  ;;  %v1375_v39 = vmax.f32 %v1247_v27, %v1311_v35  ;;  %1409 = vst [vmem:[%s2085_s21 + $0xf8] sm:$0xff] %v1345_v36 }
 0x130   : > { %1441 = vst [vmem:[%s2085_s21 + $0x1f8] sm:$0xff] %v1377_v37  ;;  %1407 = vst [vmem:[%s2085_s21 + $0xe8] sm:$0xff] %v1343_v38 }
 0x131   : > { %1439 = vst [vmem:[%s2085_s21 + $0x1e8] sm:$0xff] %v1375_v39 }
 0x132   : > { %1845 = shalt.err (!%p1842_p5)
}
 0x133   : > { %s1846_s7 = scalar_lea.hbm %s2206_s28, 8192  ;;  %s1850_s10 = scalar_lea.hbm %s2267_s3, 16384 }
 0x134   : > { %p1847_p6 = scmp.ne.s32.totalorder %s2206_s28, %s1846_s7  ;;  %p1851_p10 = scmp.lt.u32.totalorder %s2206_s28, %s2267_s3 }
 0x135   : > { %p1852_p11 = scmp.lt.u32.totalorder %s1850_s10, %s1846_s7  ;;  %p1854_p13 = scmp.lt.u32.totalorder %s1846_s7, %s2206_s28 }
 0x136   : > { %p1848_p7 = pnand %p1847_p6, %p1975_p4 }
 0x137   : > { %p1853_p12 = por %p1852_p11, %p1851_p10 }
 0x138   : > { %p1849_p9 = pneg %p1848_p7 }
 0x139   : > { %p1855_p0 = por %p1854_p13, %p1853_p12 }
 0x13b   : > { %p1856_p1 = pnand %p1855_p0, %p1849_p9 }
 0x13d   : > { %1859 = shalt.err (!%p1856_p1)
}
 0x13e   : > { %s1913_s19 = smov 128   ;;  %s1914_s21 = smov 8  }
 0x13f   : > { %1740 = dma.vmem_to_hbm [thread:$0]  (%p1975_p4), %s2208_s26, 8192, %s2206_s28, %s2218_s29, %s1913_s19, %s1913_s19, %s1914_s21  }
 0x140 PF: > { %p1746_p2 = scmp.ge.s32.totalorder %s1910_s17, 2  ;;  %s1471_s23 = sand.u32 1, %s1890_s12  }
 0x141   : > { %s1472_s15 = scalar_lea.sflag [#allocation4], %s1471_s23 }
 0x142   : > { %p1743_p3 = pnand %p1746_p2, %p1982_p8 }
 0x144   : > { %1885 = dma.done.wait (!%p1743_p3), %s1472_s15, 8192  }
 0x145   : > { %1887 = vsyncadd (!%p1743_p3), %s1472_s15, 4294959104  ;;  %s16_s17 = sadd.s32 1, %s1910_s17   ;;  %s2270_s12 = smov %s1894_s13 }
 0x146   : > { %p13_p5 = scmp.ge.s32.totalorder %s16_s17, 4   ;;  %s2271_s13 = smov %s1898_s14 }
 0x147   : > { %s2272_s14 = smov %s1988_s25  ;;  %s2273_s15 = smov %s1906_s16 }
 0x148   : > { %s2274_s16 = smov %s2276_s20  ;;  %15 = sbr.rel (!%p13_p5) target bundleno = 4 (0x4), region = 78 }
 0x14f   :  { %1477 = vsyncpa [#allocation4], 1 }
 0x150   :  { %1479 = vsyncpa [#allocation4 + $0x1], 1 }

</bundles_post_ra>
